<compile_context>
chip_gen: v6e
topology: v6e:2x2x1
jax: 0.10.0
libtpu: 0.0.40
codegen_flags: <defaults>
</compile_context>

<pallas_src>
import functools

import jax
import jax.numpy as jnp
from jax import lax
from jax.experimental import pallas as pl
from jax.experimental.pallas import tpu as pltpu


def _embeddings_kernel(we_ref, pos_ref, tt_ref, type_ref, gb_ref, o_ref,
                       *, eps, type_vocab):
    # we_ref  : [tb, H]  gathered word embeddings (table dtype)
    # pos_ref : [tb, H]  positional embeddings for this token tile
    # tt_ref  : [tb, 1]  int32 token-type ids
    # type_ref: [T,  H]  full token-type table, resident in VMEM
    # gb_ref  : [2,  H]  row0 = gamma, row1 = beta, resident in VMEM
    # o_ref   : [tb, H]
    x = we_ref[...].astype(jnp.float32) + pos_ref[...].astype(jnp.float32)

    # In-kernel token-type selection: static loop over the (tiny) type vocab,
    # masked add of the broadcast table row. Avoids any [N,H] type-emb slab.
    tt = tt_ref[...]                                   # (tb, 1) int32
    table = type_ref[...].astype(jnp.float32)          # (T, H)
    for t in range(type_vocab):                        # static, small
        mask = jnp.where(tt == t, 1.0, 0.0)            # (tb, 1) f32
        x = x + mask * table[t:t + 1, :]               # broadcast (1,H)

    # One-pass LayerNorm stats in f32.
    h = x.shape[-1]
    inv_h = 1.0 / float(h)
    s1 = jnp.sum(x, axis=-1, keepdims=True)
    s2 = jnp.sum(x * x, axis=-1, keepdims=True)
    mean = s1 * inv_h
    var = jnp.maximum(s2 * inv_h - mean * mean, 0.0)
    inv = lax.rsqrt(var + eps)                         # EUP rsqrt

    gamma = gb_ref[0:1, :].astype(jnp.float32)
    beta = gb_ref[1:2, :].astype(jnp.float32)
    y = (x - mean) * inv * gamma + beta
    o_ref[...] = y.astype(o_ref.dtype)


def _pick_token_tile(seq_len, max_tile):
    """Largest multiple-of-8 tile <= max_tile that divides seq_len if possible."""
    max_tile = max(8, (int(max_tile) // 8) * 8)
    if seq_len <= max_tile:
        return ((seq_len + 7) // 8) * 8
    for tb in range(max_tile, 7, -8):
        if seq_len % tb == 0:
            return tb
    return max_tile  # ragged tail -> pad the (tiny) id arrays only


def bert_embeddings(input_ids, word_emb, pos_emb, type_emb, ln_gamma, ln_beta,
                    *, token_type_ids=None, position_ids=None,
                    layer_norm_eps=1e-12, token_tile=1024):
    """BertEmbeddings forward. input_ids: [B, S] int32 -> [B, S, H]."""
    B, S = input_ids.shape
    H = word_emb.shape[1]
    T = type_emb.shape[0]
    out_dtype = word_emb.dtype

    tb = _pick_token_tile(S, token_tile)
    n_j = pl.cdiv(S, tb)
    s_pad = n_j * tb

    # Pad the tiny int32 id arrays (not [N,H] embedding slabs) on ragged tails.
    input_ids = input_ids.astype(jnp.int32)
    if s_pad != S:
        input_ids = jnp.pad(input_ids, ((0, 0), (0, s_pad - S)))
        if token_type_ids is not None:
            token_type_ids = jnp.pad(token_type_ids, ((0, 0), (0, s_pad - S)))
        if position_ids is not None:
            position_ids = jnp.pad(position_ids, ((0, 0), (0, s_pad - S)))

    if token_type_ids is None:
        token_type_ids = jnp.zeros((B, s_pad), dtype=jnp.int32)
    tt3d = token_type_ids.astype(jnp.int32).reshape(B, s_pad, 1)

    # Word-embedding gather (data-dependent rows over a big table -> XLA gather).
    we = jnp.take(word_emb, input_ids.reshape(-1), axis=0).reshape(B, s_pad, H)

    # Position stream. Default position_ids == arange(S) is batch-invariant:
    # a single [s_pad, H] slab read directly by the kernel (no per-token gather,
    # and its tile stays resident across the inner batch grid axis).
    if position_ids is None:
        pos_idx = jnp.minimum(jnp.arange(s_pad, dtype=jnp.int32),
                              pos_emb.shape[0] - 1)
        pos_stream = jnp.take(pos_emb, pos_idx, axis=0)            # [s_pad, H]
        pos_spec = pl.BlockSpec((tb, H), lambda j, b: (j, 0))
        pos_read_bytes = pos_stream.size * jnp.dtype(pos_stream.dtype).itemsize
    else:
        pos_stream = jnp.take(pos_emb, position_ids.astype(jnp.int32).reshape(-1),
                              axis=0).reshape(B, s_pad, H)
        pos_spec = pl.BlockSpec((None, tb, H), lambda j, b: (b, j, 0))
        pos_read_bytes = pos_stream.size * jnp.dtype(pos_stream.dtype).itemsize

    gamma_beta = jnp.stack(
        [ln_gamma.reshape(H), ln_beta.reshape(H)], axis=0)          # (2, H)

    it_in = jnp.dtype(word_emb.dtype).itemsize
    it_out = jnp.dtype(out_dtype).itemsize
    n_tok = B * s_pad
    cost = pl.CostEstimate(
        flops=(7 + 2 * T) * n_tok * H,
        transcendentals=n_tok,
        bytes_accessed=(n_tok * H * it_in            # word-emb stream read
                        + pos_read_bytes             # position stream read
                        + n_tok * 4                  # token-type ids
                        + (T + 2) * H * 4            # resident tables
                        + n_tok * H * it_out),       # output write
    )

    kernel = functools.partial(_embeddings_kernel,
                               eps=float(layer_norm_eps), type_vocab=int(T))

    out = pl.pallas_call(
        kernel,
        out_shape=jax.ShapeDtypeStruct((B, s_pad, H), out_dtype),
        grid_spec=pltpu.PrefetchScalarGridSpec(
            num_scalar_prefetch=0,
            # Batch innermost so the pos / token-type / table blocks with
            # batch-invariant indices stay resident between consecutive steps.
            grid=(n_j, B),
            in_specs=[
                pl.BlockSpec((None, tb, H), lambda j, b: (b, j, 0)),   # we
                pos_spec,                                              # pos
                pl.BlockSpec((None, tb, 1), lambda j, b: (b, j, 0)),   # tt ids
                pl.BlockSpec((T, H), lambda j, b: (0, 0)),             # type table
                pl.BlockSpec((2, H), lambda j, b: (0, 0)),             # gamma/beta
            ],
            out_specs=pl.BlockSpec((None, tb, H), lambda j, b: (b, j, 0)),
        ),
        compiler_params=pltpu.CompilerParams(
            dimension_semantics=("parallel", "parallel"),
            vmem_limit_bytes=48 * 1024 * 1024),
        cost_estimate=cost,
    )(we, pos_stream, tt3d, type_emb, gamma_beta)

    if s_pad != S:
        out = out[:, :S, :]
    # TODO(synk): dropout is identity here (eval-mode forward); training-mode
    # dropout would use pltpu.prng_seed + pltpu.stateful_bernoulli in-kernel.
    return out


if __name__ == "__main__":
    batch, seq, hidden = 2, 8, 32
    vocab_size, max_pos, type_vocab = 50, 16, 2
    eps = 1e-12

    key = jax.random.PRNGKey(0)
    k_ids, k_tt, k_we, k_pe, k_te, k_g, k_b = jax.random.split(key, 7)

    input_ids = jax.random.randint(k_ids, (batch, seq), 0, vocab_size, dtype=jnp.int32)
    token_type_ids = jax.random.randint(k_tt, (batch, seq), 0, type_vocab, dtype=jnp.int32)

    word_emb = 0.02 * jax.random.normal(k_we, (vocab_size, hidden), jnp.float32)
    pos_emb = 0.02 * jax.random.normal(k_pe, (max_pos, hidden), jnp.float32)
    type_emb = 0.02 * jax.random.normal(k_te, (type_vocab, hidden), jnp.float32)
    ln_gamma = 1.0 + 0.1 * jax.random.normal(k_g, (hidden,), jnp.float32)
    ln_beta = 0.1 * jax.random.normal(k_b, (hidden,), jnp.float32)

    out = bert_embeddings(input_ids, word_emb, pos_emb, type_emb, ln_gamma, ln_beta,
                          token_type_ids=token_type_ids, layer_norm_eps=eps)
    out = jax.block_until_ready(out)

    # Plain-JAX reference (eval-mode: dropout is identity).
    position_ids = jnp.broadcast_to(jnp.arange(seq, dtype=jnp.int32)[None, :], (batch, seq))
    x = word_emb[input_ids] + pos_emb[position_ids] + type_emb[token_type_ids]
    mean = x.mean(-1, keepdims=True)
    var = ((x - mean) ** 2).mean(-1, keepdims=True)
    ref = (x - mean) / jnp.sqrt(var + eps) * ln_gamma + ln_beta

    assert out.shape == (batch, seq, hidden)
    assert jnp.allclose(out, ref, atol=1e-4, rtol=1e-4), "mismatch vs reference"

    print("KERNEL_OK")
</pallas_src>

<mosaic_0001>
module attributes {stable_mosaic.version = 11 : i64} {
  func.func @_embeddings_kernel(%arg0: i32, %arg1: i32, %arg2: memref<1x8x32xf32, #tpu.memory_space<vmem>>, %arg3: memref<8x32xf32, #tpu.memory_space<vmem>>, %arg4: memref<1x8x1xi32, #tpu.memory_space<vmem>>, %arg5: memref<2x32xf32, #tpu.memory_space<vmem>>, %arg6: memref<2x32xf32, #tpu.memory_space<vmem>>, %arg7: memref<1x8x32xf32, #tpu.memory_space<vmem>>) attributes {dimension_semantics = [#tpu.dimension_semantics<parallel>, #tpu.dimension_semantics<parallel>], iteration_bounds = array<i64: 1, 2>, scalar_prefetch = 0 : i64, scratch_operands = 0 : i64, tpu.core_type = #tpu.core_type<tc>, window_params = [{transform_indices = @transform_0, window_bounds = array<i64: 1, 8, 32>}, {transform_indices = @transform_1, window_bounds = array<i64: 8, 32>}, {transform_indices = @transform_2, window_bounds = array<i64: 1, 8, 1>}, {pipeline_mode = #tpu.pipeline_mode<synchronous>, transform_indices = @transform_3, window_bounds = array<i64: 2, 32>}, {pipeline_mode = #tpu.pipeline_mode<synchronous>, transform_indices = @transform_4, window_bounds = array<i64: 2, 32>}, {transform_indices = @transform_5, window_bounds = array<i64: 1, 8, 32>}]} {
    %c0 = arith.constant 0 : index
    %c0_0 = arith.constant 0 : index
    %c0_1 = arith.constant 0 : index
    %0 = vector.load %arg2[%c0, %c0_0, %c0_1] : memref<1x8x32xf32, #tpu.memory_space<vmem>>, vector<1x8x32xf32>
    %1 = vector.shape_cast %0 : vector<1x8x32xf32> to vector<8x32xf32>
    %c0_2 = arith.constant 0 : index
    %c0_3 = arith.constant 0 : index
    %2 = vector.load %arg3[%c0_2, %c0_3] : memref<8x32xf32, #tpu.memory_space<vmem>>, vector<8x32xf32>
    %3 = arith.addf %1, %2 : vector<8x32xf32>
    %c0_4 = arith.constant 0 : index
    %c0_5 = arith.constant 0 : index
    %c0_6 = arith.constant 0 : index
    %4 = vector.load %arg4[%c0_4, %c0_5, %c0_6] : memref<1x8x1xi32, #tpu.memory_space<vmem>>, vector<1x8x1xi32>
    %5 = vector.shape_cast %4 : vector<1x8x1xi32> to vector<8x1xi32>
    %c0_7 = arith.constant 0 : index
    %c0_8 = arith.constant 0 : index
    %6 = vector.load %arg5[%c0_7, %c0_8] : memref<2x32xf32, #tpu.memory_space<vmem>>, vector<2x32xf32>
    %c0_i32 = arith.constant 0 : i32
    %7 = vector.broadcast %c0_i32 : i32 to vector<8x1xi32>
    %8 = arith.cmpi eq, %5, %7 : vector<8x1xi32>
    %cst = arith.constant 1.000000e+00 : f32
    %cst_9 = arith.constant 0.000000e+00 : f32
    %9 = vector.broadcast %cst : f32 to vector<8x1xf32>
    %10 = vector.broadcast %cst_9 : f32 to vector<8x1xf32>
    %11 = arith.select %8, %9, %10 : vector<8x1xi1>, vector<8x1xf32>
    %12 = vector.extract_strided_slice %6 {offsets = [0, 0], sizes = [1, 32], strides = [1, 1]} : vector<2x32xf32> to vector<1x32xf32>
    %13 = vector.broadcast %11 : vector<8x1xf32> to vector<8x32xf32>
    %14 = vector.broadcast %12 : vector<1x32xf32> to vector<8x32xf32>
    %15 = arith.mulf %13, %14 : vector<8x32xf32>
    %16 = arith.addf %3, %15 : vector<8x32xf32>
    %c1_i32 = arith.constant 1 : i32
    %17 = vector.broadcast %c1_i32 : i32 to vector<8x1xi32>
    %18 = arith.cmpi eq, %5, %17 : vector<8x1xi32>
    %cst_10 = arith.constant 1.000000e+00 : f32
    %cst_11 = arith.constant 0.000000e+00 : f32
    %19 = vector.broadcast %cst_10 : f32 to vector<8x1xf32>
    %20 = vector.broadcast %cst_11 : f32 to vector<8x1xf32>
    %21 = arith.select %18, %19, %20 : vector<8x1xi1>, vector<8x1xf32>
    %22 = vector.extract_strided_slice %6 {offsets = [1, 0], sizes = [1, 32], strides = [1, 1]} : vector<2x32xf32> to vector<1x32xf32>
    %23 = vector.broadcast %21 : vector<8x1xf32> to vector<8x32xf32>
    %24 = vector.broadcast %22 : vector<1x32xf32> to vector<8x32xf32>
    %25 = arith.mulf %23, %24 : vector<8x32xf32>
    %26 = arith.addf %16, %25 : vector<8x32xf32>
    %cst_12 = arith.constant dense<0.000000e+00> : vector<8xf32>
    %27 = vector.multi_reduction <add>, %26, %cst_12 [1] : vector<8x32xf32> to vector<8xf32>
    %28 = vector.shape_cast %27 : vector<8xf32> to vector<8x1xf32>
    %29 = arith.mulf %26, %26 : vector<8x32xf32>
    %cst_13 = arith.constant dense<0.000000e+00> : vector<8xf32>
    %30 = vector.multi_reduction <add>, %29, %cst_13 [1] : vector<8x32xf32> to vector<8xf32>
    %31 = vector.shape_cast %30 : vector<8xf32> to vector<8x1xf32>
    %cst_14 = arith.constant 3.125000e-02 : f32
    %32 = vector.broadcast %cst_14 : f32 to vector<8x1xf32>
    %33 = arith.mulf %28, %32 : vector<8x1xf32>
    %cst_15 = arith.constant 3.125000e-02 : f32
    %34 = vector.broadcast %cst_15 : f32 to vector<8x1xf32>
    %35 = arith.mulf %31, %34 : vector<8x1xf32>
    %36 = arith.mulf %33, %33 : vector<8x1xf32>
    %37 = arith.subf %35, %36 : vector<8x1xf32>
    %cst_16 = arith.constant 0.000000e+00 : f32
    %38 = vector.broadcast %cst_16 : f32 to vector<8x1xf32>
    %39 = arith.maximumf %37, %38 : vector<8x1xf32>
    %cst_17 = arith.constant 9.99999996E-13 : f32
    %40 = vector.broadcast %cst_17 : f32 to vector<8x1xf32>
    %41 = arith.addf %39, %40 : vector<8x1xf32>
    %42 = math.rsqrt %41 : vector<8x1xf32>
    %c0_18 = arith.constant 0 : index
    %c0_19 = arith.constant 0 : index
    %43 = vector.load %arg6[%c0_18, %c0_19] : memref<2x32xf32, #tpu.memory_space<vmem>>, vector<1x32xf32>
    %c1 = arith.constant 1 : index
    %c0_20 = arith.constant 0 : index
    %44 = vector.load %arg6[%c1, %c0_20] : memref<2x32xf32, #tpu.memory_space<vmem>>, vector<1x32xf32>
    %45 = vector.broadcast %33 : vector<8x1xf32> to vector<8x32xf32>
    %46 = arith.subf %26, %45 : vector<8x32xf32>
    %47 = vector.broadcast %42 : vector<8x1xf32> to vector<8x32xf32>
    %48 = arith.mulf %46, %47 : vector<8x32xf32>
    %49 = vector.broadcast %43 : vector<1x32xf32> to vector<8x32xf32>
    %50 = arith.mulf %48, %49 : vector<8x32xf32>
    %51 = vector.broadcast %44 : vector<1x32xf32> to vector<8x32xf32>
    %52 = arith.addf %50, %51 : vector<8x32xf32>
    %c0_21 = arith.constant 0 : index
    %c0_22 = arith.constant 0 : index
    %c0_23 = arith.constant 0 : index
    %53 = vector.load %arg7[%c0_21, %c0_22, %c0_23] : memref<1x8x32xf32, #tpu.memory_space<vmem>>, vector<1x8x32xf32>
    %54 = vector.shape_cast %53 : vector<1x8x32xf32> to vector<8x32xf32>
    %55 = vector.shape_cast %52 : vector<8x32xf32> to vector<1x8x32xf32>
    tpu.vector_store %arg7[%c0_21, %c0_22, %c0_23], %55 {strides = array<i32>} : memref<1x8x32xf32, #tpu.memory_space<vmem>>, vector<1x8x32xf32>,
    return
  }
  func.func @transform_0(%arg0: i32, %arg1: i32) -> (i32, i32, i32) {
    %c0_i32 = arith.constant 0 : i32
    %c0_i32_0 = arith.constant 0 : i32
    return %arg1, %arg0, %c0_i32 : i32, i32, i32
  }
  func.func @transform_1(%arg0: i32, %arg1: i32) -> (i32, i32) {
    %c0_i32 = arith.constant 0 : i32
    %c0_i32_0 = arith.constant 0 : i32
    return %arg0, %c0_i32 : i32, i32
  }
  func.func @transform_2(%arg0: i32, %arg1: i32) -> (i32, i32, i32) {
    %c0_i32 = arith.constant 0 : i32
    %c0_i32_0 = arith.constant 0 : i32
    return %arg1, %arg0, %c0_i32 : i32, i32, i32
  }
  func.func @transform_3(%arg0: i32, %arg1: i32) -> (i32, i32) {
    %c0_i32 = arith.constant 0 : i32
    %c0_i32_0 = arith.constant 0 : i32
    %c0_i32_1 = arith.constant 0 : i32
    return %c0_i32, %c0_i32_0 : i32, i32
  }
  func.func @transform_4(%arg0: i32, %arg1: i32) -> (i32, i32) {
    %c0_i32 = arith.constant 0 : i32
    %c0_i32_0 = arith.constant 0 : i32
    %c0_i32_1 = arith.constant 0 : i32
    return %c0_i32, %c0_i32_0 : i32, i32
  }
  func.func @transform_5(%arg0: i32, %arg1: i32) -> (i32, i32, i32) {
    %c0_i32 = arith.constant 0 : i32
    %c0_i32_0 = arith.constant 0 : i32
    return %arg1, %arg0, %c0_i32 : i32, i32, i32
  }
}

</mosaic_0001>

<bundles_post_ra>
// kernel: tpu_custom_call.1
= control target key start
LH: loop header
LB: loop body
LE: loop exit
PB: predicated region body
PF: predicated region fallthrough
CT: control target
= control target key end

     0   :  { %10 = vsyncpa [#allocation3], 0  ;;  %s833_s0 = inlined_call_operand.vmem [shape: f32[2,8,32], index: 0, kind: input, shape index: {}]   ;;  %s834_s1 = inlined_call_operand.hbm [shape: f32[8,32], index: 1, kind: input, shape index: {}]   ;;  %s835_s2 = inlined_call_operand.vmem [shape: s32[2,8,1], index: 2, kind: input, shape index: {}]   ;;  %s836_s3 = inlined_call_operand.vmem [shape: f32[2,32], index: 3, kind: input, shape index: {}]   ;;  %s837_s4 = inlined_call_operand.vmem [shape: f32[2,32], index: 4, kind: input, shape index: {}]   ;;  %s838_s5 = inlined_call_operand.hbm [shape: f32[2,8,32], index: 5, kind: output, shape index: {}]  }
   0x1   :  { %11 = vsyncpa [#allocation4], 0 }
   0x2   :  { %13 = vsyncpa [#allocation4 + $0x1], 0  ;;  %s698_s18 = smov 0   ;;  %s700_s19 = smov 0  }
   0x3   :  { %s702_s20 = smov 0   ;;  %s704_s21 = smov 0  }
   0x4   :  { %s706_s22 = smov 0   ;;  %s708_s23 = smov 0  }
   0x5 LB: > { %s469_s24 = sadd.s32 4294967295, %s662_s23   ;;  %s470_s25 = sadd.s32 4294967294, %s662_s23   ;;  %s662_s23 = sphi %s708_s23, %s19_s23   ;;  %s658_s22 = sphi %s706_s22, %s847_s22   ;;  %s654_s21 = sphi %s704_s21, %s846_s21   ;;  %s650_s20 = sphi %s702_s20, %s845_s20   ;;  %s646_s19 = sphi %s700_s19, %s844_s19   ;;  %s642_s18 = sphi %s698_s18, %s843_s18  }
   0x6   : > { %s28_s26 = sadd.s32 1, %s658_s22  ;;  %s164_s27 = sadd.s32 1, %s650_s20 }
   0x7   : > { %p29_p0 = scmp.ge.s32.totalorder %s28_s26, 2  ;;  %p174_p1 = scmp.ne.s32.totalorder %s650_s20, %s646_s19 }
   0x8   : > { %p175_p2 = scmp.eq.s32.totalorder %s469_s24, 1  ;;  %p180_p3 = scmp.ne.s32.totalorder %s646_s19, %s642_s18 }
   0x9   : > { %s849_s26 = smov (%p29_p0, %s28_s26), 0  ;;  %p181_p5 = scmp.eq.s32.totalorder %s470_s25, 1 }
   0xa   : > { %p738_p4 = por %p175_p2, %p174_p1  ;;  %s159_s29 = ssub.s32 %s658_s22, %s849_s26 }
   0xb   : > { %p471_p6 = scmp.ge.s32.totalorder %s662_s23, 1  ;;  %p162_p7 = scmp.eq.s32.totalorder %s159_s29, 0 }
   0xc   : > { %p745_p8 = por %p181_p5, %p180_p3  ;;  %p188_p9 = scmp.lt.s32.totalorder %s662_s23, 3 }
   0xd   : > { %s751_s6 = scalar_select %p162_p7, %s650_s20, %s164_s27  }
   0xe   : > { %p753_p10 = pnand %p471_p6, %p188_p9  ;;  %p757_p11 = scmp.eq.s32.totalorder %s469_s24, 0 }
   0xf   : > { %s664_s9 = smov [#allocation2]  }
  0x10   : > { %p491_p12 = pneg %p753_p10  ;;  %s203_s10 = sshll.u32 %s664_s9, 4  ;;  %s204_s10 = int_to_ptr.vmem [resolvable:$true] %s203_s10 }
  0x11   : > { %s567_s11 = scalar_lea.vmem %s204_s10, 128  ;;  %p575_p5 = scmp.lt.s32.totalorder %s204_s10, %s204_s10 }
  0x12   : > { %p492_p13 = pnand %p757_p11, %p491_p12  ;;  %p568_p1 = scmp.ne.s32.totalorder %s204_s10, %s567_s11 }
  0x13   : > { %p576_p6 = scmp.lt.s32.totalorder %s567_s11, %s567_s11 }
  0x14   : > { %p558_p0 = pneg %p492_p13 }
  0x15   : > { %p577_p7 = por %p576_p6, %p575_p5 }
  0x16   : > { %p570_p2 = pnand %p568_p1, %p558_p0 }
  0x18   : > { %p571_p3 = pneg %p570_p2 }
  0x1a   : > { %p578_p9 = pnand %p577_p7, %p571_p3 }
  0x1c   : > { %581 = shalt.err (!%p578_p9)
}
  0x1d   : > { %494 = dma.hbm_to_vmem [thread:$0]  (!%p492_p13), %s834_s1, 128, %s204_s10, [#allocation3]  }
  0x1e   : > { %242 = sbr.rel (%p753_p10) target bundleno = 361 (0x169), region = 40 }
  0x23   : > { %633 = dma.done.wait (%p757_p11), [#allocation3], 128  }
  0x24   : > { %635 = vsyncadd (%p757_p11), [#allocation3], 4294967168  ;;  %p279_p12 = scmp.lt.s32.totalorder %s654_s21, 1  ;;  %v665_v0 = vmov 0   ;;  %v666_v2 = vmov 0.0   ;;  %v305_v5 = vlaneseq  ;;  %v294_v12 = vld [vmem:[#allocation2] sm:$0xff] }
  0x25   : > { %553 = vset.pattern.permute.xlu0 %v665_v0  ;;  %v297_v8 = vld [vmem:[%s836_s3] sm:$0x3]  ;;  %vm324_vm2 = vcmask 261120   ;;  %s276_s9 = sand.u32 1, %s646_s19  }
  0x26   : > { %s280_s14 = scalar_select %p279_p12, %s654_s21, 1  ;;  %v306_v6 = vshrl.u32 %v305_v5, 7  ;;  %v479_v34 = vld [vmem:[%s837_s4] ss:$0 sm:$0xff]  ;;  %v480_v36 = vld [vmem:[%s837_s4 + $0x1] ss:$0 sm:$0xff] }
  0x27   : > { %s476_s10 = sshll.u32 %s276_s9, 3  ;;  %s355_s29 = scalar_lea.sflag [#allocation4], %s276_s9 }
  0x28   : > { %s477_s15 = sshll.u32 %s280_s14, 3  ;;  %v307_v7 = vsub.s32 0, %v306_v6  ;;  %v320_v10 = vsub.s32 1, %v306_v6  ;;  %s278_s16 = scalar_lea.vmem [#allocation5], %s476_s10 }
  0x29   : > { %s292_s24 = scalar_lea.vmem %s835_s2, %s477_s15  ;;  %s285_s8 = scalar_lea.vmem %s833_s0, %s477_s15 }
  0x2a   : > { %v296_v1 = vld [vmem:[%s292_s24] sm:$0xff]  ;;  %v308_v9 = vrot.slane %v297_v8, %v307_v7  ;;  %v321_v16 = vrot.slane %v297_v8, %v320_v10  ;;  %s482_s15 = sshll.u32 %s654_s21, 7  ;;  %s369_s17 = sshll.u32 %s278_s16, 4  ;;  %s370_s17 = int_to_ptr.vmem [resolvable:$true] %s369_s17 }
  0x2b   : > { %vm298_vm0 = vcmp.eq.s32.totalorder %v296_v1, 0  ;;  %vm311_vm1 = vcmp.eq.s32.totalorder %v296_v1, 1  ;;  %v293_v11 = vld [vmem:[%s285_s8] sm:$0xff]  ;;  %s367_s27 = scalar_lea.hbm %s838_s5, %s482_s15  ;;  %s582_s7 = scalar_lea.vmem %s370_s17, 128 }
  0x2c   : > { %v299_v3 = vsel %vm298_vm0, 1.0, %v666_v2  ;;  %v312_v4 = vsel %vm311_vm1, 1.0, %v666_v2  ;;  %v295_v14 = vadd.f32 %v294_v12, %v293_v11  ;;  %p583_p10 = scmp.ne.s32.totalorder %s370_s17, %s582_s7  ;;  %s667_s8 = smov [#allocation5]  }
  0x2d   : > { %302 = vperm.xlu0 %553, %v299_v3   ;;  %s586_s11 = sshll.u32 %s667_s8, 4  ;;  %s587_s11 = int_to_ptr.vmem [resolvable:$false] %s586_s11 }
  0x2e   : > { %p584_p11 = pnand %p583_p10, %p738_p4  ;;  %s588_s21 = scalar_lea.vmem %s587_s11, 256 }
  0x2f   : > { %p589_p0 = scmp.lt.s32.totalorder %s370_s17, %s587_s11  ;;  %p590_p1 = scmp.lt.s32.totalorder %s588_s21, %s582_s7 }
  0x30   : > { %p585_p13 = pneg %p584_p11 }
  0x31   : > { %315 = vperm.xlu0 %553, %v312_v4   ;;  %p591_p2 = por %p590_p1, %p589_p0 }
  0x33   : > { %p592_p3 = pnand %p591_p2, %p585_p13 }
  0xa8   : > { %v303_v13 = vpop.permute.xlu0 %302 }
  0xa9   : > { %v309_v15 = vmul.f32 %v308_v9, %v303_v13 }
  0xab   : > { %v310_v18 = vadd.f32 %v309_v15, %v295_v14 }
  0xac   : > { %v316_v17 = vpop.permute.xlu0 %315 }
  0xad   : > { %v322_v19 = vmul.f32 %v321_v16, %v316_v17 }
  0xaf   : > { %v323_v20 = vadd.f32 %v322_v19, %v310_v18 }
  0xb1   : > { %v325_v21 = vsel %vm324_vm2, %v323_v20, 0.0  ;;  %v328_v22 = vmul.f32 %v323_v20, %v323_v20 }
  0xb2   : > { %326 = vadd.xlane.f32.xlu1 %v325_v21 }
  0xb3   : > { %v329_v23 = vsel %vm324_vm2, %v328_v22, 0.0 }
  0xb6   : > { %330 = vadd.xlane.f32.xlu1 %v329_v23 }
 0x13b   : > { %v327_v24 = vpop.xlane.xlu1 %326 }
 0x13c   : > { %v332_v25 = vmul.f32 0.03125, %v327_v24 }
 0x13e   : > { %v334_v27 = vmul.f32 %v332_v25, %v332_v25  ;;  %v341_v32 = vsub.f32 %v323_v20, %v332_v25 }
 0x13f   : > { %v331_v26 = vpop.xlane.xlu1 %330 }
 0x140   : > { %v333_v28 = vmul.f32 0.03125, %v331_v26 }
 0x142   : > { %v335_v29 = vsub.f32 %v333_v28, %v334_v27 }
 0x144   : > { %v336_v30 = vmax.f32 %v335_v29, 0.0 }
 0x146   : > { %v337_v31 = vadd.f32 1e-12, %v336_v30 }
 0x148   : > { %554 = vrsqrt.f32 %v337_v31 }
 0x155   : > { %v555_v33 = vpop.eup %554 }
 0x156   : > { %v342_v35 = vmul.f32 %v555_v33, %v341_v32 }
 0x158   : > { %v347_v37 = vmul.f32 %v479_v34, %v342_v35 }
 0x15a   : > { %v352_v38 = vadd.f32 %v480_v36, %v347_v37 }
 0x15c   : > { %353 = vst.msk [vmem:[%s278_s16] sm:$0xff] %vm324_vm2, %v352_v38 }
 0x15d   : > { %595 = shalt.err (!%p592_p3)
}
 0x15e   : > { %s596_s10 = scalar_lea.hbm %s367_s27, 128  ;;  %s600_s13 = scalar_lea.hbm %s838_s5, 256 }
 0x15f   : > { %p597_p5 = scmp.ne.s32.totalorder %s367_s27, %s596_s10  ;;  %p601_p9 = scmp.lt.s32.totalorder %s367_s27, %s838_s5 }
 0x160   : > { %p602_p12 = scmp.lt.s32.totalorder %s600_s13, %s596_s10 }
 0x161   : > { %p598_p6 = pnand %p597_p5, %p738_p4 }
 0x162   : > { %p603_p10 = por %p602_p12, %p601_p9 }
 0x163   : > { %p599_p7 = pneg %p598_p6 }
 0x165   : > { %p604_p11 = pnand %p603_p10, %p599_p7 }
 0x167   : > { %607 = shalt.err (!%p604_p11)
}
 0x168   : > { %489 = dma.vmem_to_hbm [thread:$0]  (%p738_p4), %s370_s17, 128, %s367_s27, %s355_s29  }
 0x169 PF: > { %p501_p13 = scmp.ge.s32.totalorder %s662_s23, 2  ;;  %s381_s16 = sand.u32 1, %s642_s18  }
 0x16a   : > { %s382_s24 = scalar_lea.sflag [#allocation4], %s381_s16 }
 0x16b   : > { %p496_p0 = pnand %p501_p13, %p745_p8 }
 0x16d   : > { %p497_p1 = pneg %p496_p0 }
 0x16f   : > { %637 = dma.done.wait (%p497_p1), %s382_s24, 128  }
 0x170   : > { %639 = vsyncadd (%p497_p1), %s382_s24, 4294967168  ;;  %s19_s23 = sadd.s32 1, %s662_s23   ;;  %s843_s18 = smov %s646_s19 }
 0x171   : > { %p16_p2 = scmp.ge.s32.totalorder %s19_s23, 4   ;;  %s844_s19 = smov %s650_s20 }
 0x172   : > { %s845_s20 = smov %s751_s6  ;;  %s846_s21 = smov %s658_s22 }
 0x173   : > { %s847_s22 = smov %s849_s26  ;;  %18 = sbr.rel (!%p16_p2) target bundleno = 5 (0x5), region = 84 }
 0x178   :  { %387 = vsyncpa [#allocation3], 1 }
 0x179   :  { %389 = vsyncpa [#allocation3 + $0x1], 1 }
 0x17a   :  { %390 = vsyncpa [#allocation4], 1 }
 0x17b   :  { %392 = vsyncpa [#allocation4 + $0x1], 1 }

</bundles_post_ra>
